<compile_context>
chip_gen: v6e
topology: v6e:2x2x1
jax: 0.10.0
libtpu: 0.0.40
codegen_flags: <defaults>
</compile_context>

<pallas_src>
import jax
import jax.numpy as jnp
from jax.experimental import pallas as pl
from jax.experimental.pallas import tpu as pltpu

_NEG = -1e30  # finite "-inf": avoids inf-inf NaNs in the online softmax


def _round_up(x, m):
    return ((x + m - 1) // m) * m


def _cdiv(a, b):
    return (a + b - 1) // b


def _vmem_capacity_bytes():
    try:
        return int(pltpu.get_tpu_info().vmem_capacity_bytes)
    except Exception:
        return 64 << 20  # conservative per-TC fallback (v7x)


def _pse_kernel(x_ref,        # [TM, Hp]  bf16 hidden rows (constant over V axis)
                w_sim_ref,    # [Hp, tv]  bf16 sim_head.weight.T tile
                b_sim_ref,    # [1, tv]   f32  sim bias tile (padded cols = -1e30)
                w1_ref,       # [tv, Ep]  bf16 eval_head[0].weight.T tile
                b1_ref,       # [1, Ep]   f32
                w2_row_ref,   # [1, Ep]   f32  eval_head[2].weight as a row
                b2_ref,       # [1, 1]    f32  (SMEM scalar)
                wf_h_ref,     # [Hp, Hp]  bf16 fusion.weight[:, :H].T
                wf_r_ref,     # [1, Hp]   f32  fusion.weight[:, H]
                bf_ref,       # [1, Hp]   f32
                adj_ref,      # [TM, Hp]  out: adjusted_state (resident over V axis)
                logits_ref,   # [TM, tv]  out: simulated_logits tile
                m_scr,        # [TM, 1]   f32  running softmax max
                l_scr,        # [TM, 1]   f32  running softmax denom
                h1_scr):      # [TM, Ep]  f32  un-normalized eval_head[0] accum
    kv = pl.program_id(1)
    x = x_ref[...]

    @pl.when(kv == 0)
    def _init():
        m_scr[...] = jnp.full_like(m_scr, _NEG)
        l_scr[...] = jnp.zeros_like(l_scr)
        h1_scr[...] = jnp.zeros_like(h1_scr)
        # fusion_gate hidden-part matmul: once per row tile, not per V step.
        adj_ref[...] = jnp.dot(
            x, wf_h_ref[...], preferred_element_type=jnp.float32
        ).astype(adj_ref.dtype)

    # sim_head for this vocab tile (bf16 MXU, f32 accumulation).
    logits = jnp.dot(x, w_sim_ref[...],
                     preferred_element_type=jnp.float32) + b_sim_ref[...]
    logits_ref[...] = logits.astype(logits_ref.dtype)

    # Online softmax + streaming eval_head[0] (Linear(V, E)) accumulation.
    m_prev = m_scr[...]
    m_new = jnp.maximum(m_prev, jnp.max(logits, axis=-1, keepdims=True))
    alpha = jnp.exp(m_prev - m_new)
    e = jnp.exp(logits - m_new)
    l_scr[...] = alpha * l_scr[...] + jnp.sum(e, axis=-1, keepdims=True)
    h1_scr[...] = alpha * h1_scr[...] + jnp.dot(
        e.astype(w1_ref.dtype), w1_ref[...],
        preferred_element_type=jnp.float32)
    m_scr[...] = m_new

    @pl.when(kv == pl.num_programs(1) - 1)
    def _finalize():
        # eval_head: ReLU(probs @ W1 + b1); then Linear(E, 1) + Sigmoid as a
        # VPU reduction (an N=1 MXU matmul would waste the MXU columns).
        h1 = jnp.maximum(h1_scr[...] / l_scr[...] + b1_ref[...], 0.0)
        r = jax.nn.sigmoid(
            jnp.sum(h1 * w2_row_ref[...], axis=-1, keepdims=True)
            + b2_ref[0, 0])
        # fusion_gate(cat(h, r)) == h @ Wf[:, :H].T + r * Wf[:, H] + bf
        adj_ref[...] = (adj_ref[...] + r * wf_r_ref[...]
                        + bf_ref[...]).astype(adj_ref.dtype)


def predictive_self_evaluator(hidden_state, params, *, tile_rows=256,
                              compute_dtype=jnp.bfloat16,
                              logits_dtype=jnp.float32):
    """hidden_state: [B, S, H] f32. Returns (adjusted_state, simulated_logits)."""
    B, S, H = hidden_state.shape
    V = params["w_sim_t"].shape[1]
    E = params["w1_t"].shape[1]          # eval_head hidden width (128 in module)
    rows = B * S

    Hp = _round_up(H, 128)
    Vp = _round_up(V, 128)
    Ep = _round_up(E, 128)

    # ---- row tiling: balanced tiles, minimal padding, >=2 tiles if possible.
    row_align = 16 if compute_dtype == jnp.bfloat16 else 8
    n_rt = max(1, _cdiv(rows, int(tile_rows)))
    tm = _round_up(_cdiv(rows, n_rt), row_align)
    if _cdiv(rows, tm) == 1 and rows >= 2 * row_align:
        tm = _round_up(_cdiv(rows, 2), row_align)   # keep both v7x TCs busy

    # ---- generation-aware VMEM budget drives tm and the vocab tile tv. ----
    capacity = _vmem_capacity_bytes()
    budget = int(0.85 * capacity)
    cd_sz = jnp.dtype(compute_dtype).itemsize
    lg_sz = jnp.dtype(logits_dtype).itemsize

    def vmem_est(tm_, tv_):
        return (2 * tm_ * Hp * cd_sz              # x tile (double-buffered)
                + 2 * tm_ * Hp * 4                # adjusted_state out tile
                + 2 * tm_ * tv_ * lg_sz           # logits out tile
                + 2 * Hp * tv_ * cd_sz            # w_sim tile
                + 2 * tv_ * 4                     # b_sim tile
                + 2 * tv_ * Ep * cd_sz            # w1 tile
                + 2 * Hp * Hp * cd_sz             # wf_h (grid-invariant)
                + 2 * (2 * Hp + 2 * Ep) * 4       # wf_r, bf, b1, w2_row
                + (tm_ * Ep + 2 * tm_ * 128) * 4  # scratch h1, m, l (lane-padded)
                + 4 * tm_ * tv_ * 4               # f32 softmax intermediates
                + (2 << 20))                      # headroom

    while tm > row_align and vmem_est(tm, 128) > budget:
        tm = _round_up(_cdiv(tm, 2), row_align)
    rows_p = _round_up(rows, tm)

    tv = 128
    t = 256
    while t <= Vp and vmem_est(tm, t) <= budget:
        tv = t
        t += 128
    n_vt = _cdiv(Vp, tv)
    tv = _round_up(_cdiv(Vp, n_vt), 128)          # balance vocab tiles
    Vp_t = n_vt * tv

    grid = (rows_p // tm, n_vt)

    # ---- pad & cast operands (no-ops when already aligned). ---------------
    x = hidden_state.reshape(rows, H).astype(compute_dtype)
    if rows_p != rows or Hp != H:
        x = jnp.pad(x, ((0, rows_p - rows), (0, Hp - H)))

    def pad2(a, r, c, cval=0.0):
        if a.shape == (r, c):
            return a
        return jnp.pad(a, ((0, r - a.shape[0]), (0, c - a.shape[1])),
                       constant_values=cval)

    w_sim = pad2(params["w_sim_t"].astype(compute_dtype), Hp, Vp_t)
    b_sim = pad2(params["b_sim"].astype(jnp.float32), 1, Vp_t, _NEG)
    w1 = pad2(params["w1_t"].astype(compute_dtype), Vp_t, Ep)
    b1 = pad2(params["b1"].astype(jnp.float32), 1, Ep)
    w2_row = pad2(params["w2_t"].reshape(1, E).astype(jnp.float32), 1, Ep)
    b2 = params["b2"].reshape(1, 1).astype(jnp.float32)
    wf_h = pad2(params["wf_h_t"].astype(compute_dtype), Hp, Hp)
    wf_r = pad2(params["wf_r"].astype(jnp.float32), 1, Hp)
    bf = pad2(params["bf"].astype(jnp.float32), 1, Hp)

    args = (x, w_sim, b_sim, w1, b1, w2_row, b2, wf_h, wf_r, bf)
    nbytes = lambda a: int(a.size) * a.dtype.itemsize

    # ---- advisory cost estimate for the XLA scheduler ----------------------
    flops = 2 * rows_p * (Hp * Vp_t + Vp_t * Ep + Ep + Hp * Hp)
    transcendentals = rows_p * (Vp_t + 2 * n_vt + 2)      # exp, alpha, sigmoid
    bytes_accessed = (rows_p * Hp * 4 + rows_p * Vp_t * lg_sz
                      + sum(nbytes(a) for a in args))
    cost = pl.CostEstimate(flops=flops, transcendentals=transcendentals,
                           bytes_accessed=bytes_accessed)

    row_map = lambda i, j: (i, 0)
    vcol_map = lambda i, j: (0, j)
    w1_map = lambda i, j: (j, 0)
    const_map = lambda i, j: (0, 0)

    in_specs = [
        pl.BlockSpec((tm, Hp), row_map),                    # x rows
        pl.BlockSpec((Hp, tv), vcol_map),                   # w_sim tile
        pl.BlockSpec((1, tv), vcol_map),                    # b_sim tile
        pl.BlockSpec((tv, Ep), w1_map),                     # w1 tile
        pl.BlockSpec((1, Ep), const_map),                   # b1
        pl.BlockSpec((1, Ep), const_map),                   # w2 row
        pl.BlockSpec(memory_space=pltpu.MemorySpace.SMEM),  # b2 scalar
        pl.BlockSpec((Hp, Hp), const_map),                  # wf_h
        pl.BlockSpec((1, Hp), const_map),                   # wf_r
        pl.BlockSpec((1, Hp), const_map),                   # bf
    ]
    out_specs = [
        pl.BlockSpec((tm, Hp), row_map),                    # adjusted_state
        pl.BlockSpec((tm, tv), lambda i, j: (i, j)),        # simulated_logits
    ]
    scratch_shapes = [
        pltpu.VMEM((tm, 1), jnp.float32),    # running max
        pltpu.VMEM((tm, 1), jnp.float32),    # running denom
        pltpu.VMEM((tm, Ep), jnp.float32),   # eval_head[0] accumulator
    ]

    vmem_limit = int(min(max(vmem_est(tm, tv), 16 << 20), int(0.9 * capacity)))

    fn = pl.pallas_call(
        _pse_kernel,
        out_shape=(jax.ShapeDtypeStruct((rows_p, Hp), jnp.float32),
                   jax.ShapeDtypeStruct((rows_p, Vp_t), logits_dtype)),
        grid_spec=pltpu.PrefetchScalarGridSpec(
            num_scalar_prefetch=0,
            grid=grid,
            in_specs=in_specs,
            out_specs=out_specs,
            scratch_shapes=scratch_shapes),
        compiler_params=pltpu.CompilerParams(
            dimension_semantics=("parallel", "arbitrary"),
            vmem_limit_bytes=vmem_limit),
        cost_estimate=cost,
    )
    adj_p, logits_p = fn(*args)

    adj = adj_p if (rows_p == rows and Hp == H) else adj_p[:rows, :H]
    logits = (logits_p if (rows_p == rows and Vp_t == V)
              else logits_p[:rows, :V])
    return adj.reshape(B, S, H), logits.reshape(B, S, V)


def init_params(key, hidden_dim, vocab_size):
    """Deterministic init mimicking PyTorch nn.Linear defaults."""
    ks = jax.random.split(key, 8)

    def lin(kw, kb, fan_in, fan_out):
        bound = 1.0 / jnp.sqrt(fan_in)
        w = jax.random.uniform(kw, (fan_out, fan_in), jnp.float32, -bound, bound)
        b = jax.random.uniform(kb, (fan_out,), jnp.float32, -bound, bound)
        return w, b

    w_sim, b_sim = lin(ks[0], ks[1], hidden_dim, vocab_size)      # [V, H], [V]
    w1, b1 = lin(ks[2], ks[3], vocab_size, 128)                   # [128, V]
    w2, b2 = lin(ks[4], ks[5], 128, 1)                            # [1, 128]
    wf, bf = lin(ks[6], ks[7], hidden_dim + 1, hidden_dim)        # [H, H+1]

    return {
        "w_sim_t": w_sim.T,                         # [H, V]
        "b_sim": b_sim.reshape(1, vocab_size),
        "w1_t": w1.T,                               # [V, 128]
        "b1": b1.reshape(1, 128),
        "w2_t": w2.T,                               # [128, 1]
        "b2": b2.reshape(1, 1),
        "wf_h_t": wf[:, :hidden_dim].T,             # [H, H]
        "wf_r": wf[:, hidden_dim].reshape(1, hidden_dim),
        "bf": bf.reshape(1, hidden_dim),
    }


def _reference(hidden_state, params, compute_dtype=jnp.bfloat16):
    """Plain-JAX reference matching the PyTorch forward (bf16 matmul numerics)."""
    cd = compute_dtype
    x = hidden_state.astype(cd)
    logits = jnp.dot(x, params["w_sim_t"].astype(cd),
                     preferred_element_type=jnp.float32) + params["b_sim"][0]
    probs = jax.nn.softmax(logits, axis=-1)
    h1 = jnp.maximum(
        jnp.dot(probs.astype(cd), params["w1_t"].astype(cd),
                preferred_element_type=jnp.float32) + params["b1"][0], 0.0)
    r = jax.nn.sigmoid(h1 @ params["w2_t"] + params["b2"][0])     # [B, S, 1]
    adj = (jnp.dot(x, params["wf_h_t"].astype(cd),
                   preferred_element_type=jnp.float32)
           + r * params["wf_r"][0] + params["bf"][0])
    return adj, logits


if __name__ == "__main__":
    B, S, H, V = 2, 8, 32, 64
    key = jax.random.PRNGKey(0)
    k_x, k_p = jax.random.split(key)
    hidden_state = jax.random.normal(k_x, (B, S, H), jnp.float32)
    params = init_params(k_p, H, V)

    adj, logits = predictive_self_evaluator(hidden_state, params)
    jax.block_until_ready((adj, logits))

    adj_ref, logits_ref = _reference(hidden_state, params)
    assert adj.shape == (B, S, H) and logits.shape == (B, S, V)
    assert jnp.allclose(adj, adj_ref, atol=2e-3, rtol=2e-3), \
        float(jnp.max(jnp.abs(adj - adj_ref)))
    assert jnp.allclose(logits, logits_ref, atol=2e-3, rtol=2e-3), \
        float(jnp.max(jnp.abs(logits - logits_ref)))

    print("KERNEL_OK")
</pallas_src>

<mosaic_0001>
module attributes {stable_mosaic.version = 11 : i64} {
  func.func @_pse_kernel(%arg0: i32, %arg1: i32, %arg2: memref<16x128xbf16, #tpu.memory_space<vmem>>, %arg3: memref<128x128xbf16, #tpu.memory_space<vmem>>, %arg4: memref<1x128xf32, #tpu.memory_space<vmem>>, %arg5: memref<128x128xbf16, #tpu.memory_space<vmem>>, %arg6: memref<1x128xf32, #tpu.memory_space<vmem>>, %arg7: memref<1x128xf32, #tpu.memory_space<vmem>>, %arg8: memref<1x1xf32, #tpu.memory_space<smem>>, %arg9: memref<128x128xbf16, #tpu.memory_space<vmem>>, %arg10: memref<1x128xf32, #tpu.memory_space<vmem>>, %arg11: memref<1x128xf32, #tpu.memory_space<vmem>>, %arg12: memref<16x128xf32, #tpu.memory_space<vmem>>, %arg13: memref<16x128xf32, #tpu.memory_space<vmem>>, %arg14: memref<16x1xf32, #tpu.memory_space<vmem>>, %arg15: memref<16x1xf32, #tpu.memory_space<vmem>>, %arg16: memref<16x128xf32, #tpu.memory_space<vmem>>) attributes {dimension_semantics = [#tpu.dimension_semantics<parallel>, #tpu.dimension_semantics<arbitrary>], iteration_bounds = array<i64: 1, 1>, scalar_prefetch = 0 : i64, scratch_operands = 3 : i64, tpu.core_type = #tpu.core_type<tc>, window_params = [{transform_indices = @transform_0, window_bounds = array<i64: 16, 128>}, {transform_indices = @transform_1, window_bounds = array<i64: 128, 128>}, {transform_indices = @transform_2, window_bounds = array<i64: 1, 128>}, {transform_indices = @transform_3, window_bounds = array<i64: 128, 128>}, {pipeline_mode = #tpu.pipeline_mode<synchronous>, transform_indices = @transform_4, window_bounds = array<i64: 1, 128>}, {pipeline_mode = #tpu.pipeline_mode<synchronous>, transform_indices = @transform_5, window_bounds = array<i64: 1, 128>}, {transform_indices = @transform_6, window_bounds = array<i64: 1, 1>}, {pipeline_mode = #tpu.pipeline_mode<synchronous>, transform_indices = @transform_7, window_bounds = array<i64: 128, 128>}, {pipeline_mode = #tpu.pipeline_mode<synchronous>, transform_indices = @transform_8, window_bounds = array<i64: 1, 128>}, {pipeline_mode = #tpu.pipeline_mode<synchronous>, transform_indices = @transform_9, window_bounds = array<i64: 1, 128>}, {transform_indices = @transform_10, window_bounds = array<i64: 16, 128>}, {transform_indices = @transform_11, window_bounds = array<i64: 16, 128>}]} {
    %c0 = arith.constant 0 : index
    %c0_0 = arith.constant 0 : index
    %0 = vector.load %arg2[%c0, %c0_0] : memref<16x128xbf16, #tpu.memory_space<vmem>>, vector<16x128xbf16>
    %c0_i32 = arith.constant 0 : i32
    %1 = arith.cmpi eq, %arg1, %c0_i32 : i32
    %2 = arith.extui %1 : i1 to i32
    %c0_i32_1 = arith.constant 0 : i32
    %3 = arith.cmpi ne, %2, %c0_i32_1 : i32
    scf.if %3 {
      %cst_27 = arith.constant -1.000000e+30 : f32
      %37 = vector.broadcast %cst_27 : f32 to vector<16x1xf32>
      %c0_28 = arith.constant 0 : index
      %c0_29 = arith.constant 0 : index
      %38 = vector.load %arg14[%c0_28, %c0_29] : memref<16x1xf32, #tpu.memory_space<vmem>>, vector<16x1xf32>
      tpu.vector_store %arg14[%c0_28, %c0_29], %37 {strides = array<i32>} : memref<16x1xf32, #tpu.memory_space<vmem>>, vector<16x1xf32>,
      %cst_30 = arith.constant 0.000000e+00 : f32
      %39 = vector.broadcast %cst_30 : f32 to vector<16x1xf32>
      %c0_31 = arith.constant 0 : index
      %c0_32 = arith.constant 0 : index
      %40 = vector.load %arg15[%c0_31, %c0_32] : memref<16x1xf32, #tpu.memory_space<vmem>>, vector<16x1xf32>
      tpu.vector_store %arg15[%c0_31, %c0_32], %39 {strides = array<i32>} : memref<16x1xf32, #tpu.memory_space<vmem>>, vector<16x1xf32>,
      %cst_33 = arith.constant 0.000000e+00 : f32
      %41 = vector.broadcast %cst_33 : f32 to vector<16x128xf32>
      %c0_34 = arith.constant 0 : index
      %c0_35 = arith.constant 0 : index
      %42 = vector.load %arg16[%c0_34, %c0_35] : memref<16x128xf32, #tpu.memory_space<vmem>>, vector<16x128xf32>
      tpu.vector_store %arg16[%c0_34, %c0_35], %41 {strides = array<i32>} : memref<16x128xf32, #tpu.memory_space<vmem>>, vector<16x128xf32>,
      %c0_36 = arith.constant 0 : index
      %c0_37 = arith.constant 0 : index
      %43 = vector.load %arg9[%c0_36, %c0_37] : memref<128x128xbf16, #tpu.memory_space<vmem>>, vector<128x128xbf16>
      %cst_38 = arith.constant dense<0.000000e+00> : vector<16x128xf32>
      %44 = tpu.matmul %0, %43, %cst_38 {dimension_numbers = #tpu.dot_dimension_numbers<[1], [0], [0], [1], [0, 0, 1, 1], [], []>} : vector<16x128xbf16>, vector<128x128xbf16>, vector<16x128xf32> -> vector<16x128xf32>
      %c0_39 = arith.constant 0 : index
      %c0_40 = arith.constant 0 : index
      %45 = vector.load %arg12[%c0_39, %c0_40] : memref<16x128xf32, #tpu.memory_space<vmem>>, vector<16x128xf32>
      tpu.vector_store %arg12[%c0_39, %c0_40], %44 {strides = array<i32>} : memref<16x128xf32, #tpu.memory_space<vmem>>, vector<16x128xf32>,
    } else {
    }
    %c0_2 = arith.constant 0 : index
    %c0_3 = arith.constant 0 : index
    %4 = vector.load %arg3[%c0_2, %c0_3] : memref<128x128xbf16, #tpu.memory_space<vmem>>, vector<128x128xbf16>
    %cst = arith.constant dense<0.000000e+00> : vector<16x128xf32>
    %5 = tpu.matmul %0, %4, %cst {dimension_numbers = #tpu.dot_dimension_numbers<[1], [0], [0], [1], [0, 0, 1, 1], [], []>} : vector<16x128xbf16>, vector<128x128xbf16>, vector<16x128xf32> -> vector<16x128xf32>
    %c0_4 = arith.constant 0 : index
    %c0_5 = arith.constant 0 : index
    %6 = vector.load %arg4[%c0_4, %c0_5] : memref<1x128xf32, #tpu.memory_space<vmem>>, vector<1x128xf32>
    %7 = vector.broadcast %6 : vector<1x128xf32> to vector<16x128xf32>
    %8 = arith.addf %5, %7 : vector<16x128xf32>
    %c0_6 = arith.constant 0 : index
    %c0_7 = arith.constant 0 : index
    %9 = vector.load %arg13[%c0_6, %c0_7] : memref<16x128xf32, #tpu.memory_space<vmem>>, vector<16x128xf32>
    tpu.vector_store %arg13[%c0_6, %c0_7], %8 {strides = array<i32>} : memref<16x128xf32, #tpu.memory_space<vmem>>, vector<16x128xf32>,
    %c0_8 = arith.constant 0 : index
    %c0_9 = arith.constant 0 : index
    %10 = vector.load %arg14[%c0_8, %c0_9] : memref<16x1xf32, #tpu.memory_space<vmem>>, vector<16x1xf32>
    %cst_10 = arith.constant dense<0xFF800000> : vector<16xf32>
    %11 = vector.multi_reduction <maximumf>, %8, %cst_10 [1] : vector<16x128xf32> to vector<16xf32>
    %12 = vector.shape_cast %11 : vector<16xf32> to vector<16x1xf32>
    %13 = arith.maximumf %10, %12 : vector<16x1xf32>
    %14 = arith.subf %10, %13 : vector<16x1xf32>
    %15 = math.exp %14 : vector<16x1xf32>
    %16 = vector.broadcast %13 : vector<16x1xf32> to vector<16x128xf32>
    %17 = arith.subf %8, %16 : vector<16x128xf32>
    %18 = math.exp %17 : vector<16x128xf32>
    %c0_11 = arith.constant 0 : index
    %c0_12 = arith.constant 0 : index
    %19 = vector.load %arg15[%c0_11, %c0_12] : memref<16x1xf32, #tpu.memory_space<vmem>>, vector<16x1xf32>
    %20 = arith.mulf %15, %19 : vector<16x1xf32>
    %cst_13 = arith.constant dense<0.000000e+00> : vector<16xf32>
    %21 = vector.multi_reduction <add>, %18, %cst_13 [1] : vector<16x128xf32> to vector<16xf32>
    %22 = vector.shape_cast %21 : vector<16xf32> to vector<16x1xf32>
    %23 = arith.addf %20, %22 : vector<16x1xf32>
    %c0_14 = arith.constant 0 : index
    %c0_15 = arith.constant 0 : index
    %24 = vector.load %arg15[%c0_14, %c0_15] : memref<16x1xf32, #tpu.memory_space<vmem>>, vector<16x1xf32>
    tpu.vector_store %arg15[%c0_14, %c0_15], %23 {strides = array<i32>} : memref<16x1xf32, #tpu.memory_space<vmem>>, vector<16x1xf32>,
    %c0_16 = arith.constant 0 : index
    %c0_17 = arith.constant 0 : index
    %25 = vector.load %arg16[%c0_16, %c0_17] : memref<16x128xf32, #tpu.memory_space<vmem>>, vector<16x128xf32>
    %26 = vector.broadcast %15 : vector<16x1xf32> to vector<16x128xf32>
    %27 = arith.mulf %26, %25 : vector<16x128xf32>
    %28 = arith.truncf %18 : vector<16x128xf32> to vector<16x128xbf16>
    %c0_18 = arith.constant 0 : index
    %c0_19 = arith.constant 0 : index
    %29 = vector.load %arg5[%c0_18, %c0_19] : memref<128x128xbf16, #tpu.memory_space<vmem>>, vector<128x128xbf16>
    %cst_20 = arith.constant dense<0.000000e+00> : vector<16x128xf32>
    %30 = tpu.matmul %28, %29, %cst_20 {dimension_numbers = #tpu.dot_dimension_numbers<[1], [0], [0], [1], [0, 0, 1, 1], [], []>} : vector<16x128xbf16>, vector<128x128xbf16>, vector<16x128xf32> -> vector<16x128xf32>
    %31 = arith.addf %27, %30 : vector<16x128xf32>
    %c0_21 = arith.constant 0 : index
    %c0_22 = arith.constant 0 : index
    %32 = vector.load %arg16[%c0_21, %c0_22] : memref<16x128xf32, #tpu.memory_space<vmem>>, vector<16x128xf32>
    tpu.vector_store %arg16[%c0_21, %c0_22], %31 {strides = array<i32>} : memref<16x128xf32, #tpu.memory_space<vmem>>, vector<16x128xf32>,
    %c0_23 = arith.constant 0 : index
    %c0_24 = arith.constant 0 : index
    %33 = vector.load %arg14[%c0_23, %c0_24] : memref<16x1xf32, #tpu.memory_space<vmem>>, vector<16x1xf32>
    tpu.vector_store %arg14[%c0_23, %c0_24], %13 {strides = array<i32>} : memref<16x1xf32, #tpu.memory_space<vmem>>, vector<16x1xf32>,
    %c0_i32_25 = arith.constant 0 : i32
    %34 = arith.cmpi eq, %arg1, %c0_i32_25 : i32
    %35 = arith.extui %34 : i1 to i32
    %c0_i32_26 = arith.constant 0 : i32
    %36 = arith.cmpi ne, %35, %c0_i32_26 : i32
    scf.if %36 {
      %c0_27 = arith.constant 0 : index
      %c0_28 = arith.constant 0 : index
      %37 = vector.load %arg16[%c0_27, %c0_28] : memref<16x128xf32, #tpu.memory_space<vmem>>, vector<16x128xf32>
      %c0_29 = arith.constant 0 : index
      %c0_30 = arith.constant 0 : index
      %38 = vector.load %arg15[%c0_29, %c0_30] : memref<16x1xf32, #tpu.memory_space<vmem>>, vector<16x1xf32>
      %39 = vector.broadcast %38 : vector<16x1xf32> to vector<16x128xf32>
      %40 = arith.divf %37, %39 : vector<16x128xf32>
      %c0_31 = arith.constant 0 : index
      %c0_32 = arith.constant 0 : index
      %41 = vector.load %arg6[%c0_31, %c0_32] : memref<1x128xf32, #tpu.memory_space<vmem>>, vector<1x128xf32>
      %42 = vector.broadcast %41 : vector<1x128xf32> to vector<16x128xf32>
      %43 = arith.addf %40, %42 : vector<16x128xf32>
      %cst_33 = arith.constant 0.000000e+00 : f32
      %44 = vector.broadcast %cst_33 : f32 to vector<16x128xf32>
      %45 = arith.maximumf %43, %44 : vector<16x128xf32>
      %c0_34 = arith.constant 0 : index
      %c0_35 = arith.constant 0 : index
      %46 = vector.load %arg7[%c0_34, %c0_35] : memref<1x128xf32, #tpu.memory_space<vmem>>, vector<1x128xf32>
      %47 = vector.broadcast %46 : vector<1x128xf32> to vector<16x128xf32>
      %48 = arith.mulf %45, %47 : vector<16x128xf32>
      %cst_36 = arith.constant dense<0.000000e+00> : vector<16xf32>
      %49 = vector.multi_reduction <add>, %48, %cst_36 [1] : vector<16x128xf32> to vector<16xf32>
      %50 = vector.shape_cast %49 : vector<16xf32> to vector<16x1xf32>
      %c0_37 = arith.constant 0 : index
      %c0_38 = arith.constant 0 : index
      %51 = memref.load %arg8[%c0_37, %c0_38] : memref<1x1xf32, #tpu.memory_space<smem>>
      %52 = vector.broadcast %51 : f32 to vector<16x1xf32>
      %53 = arith.addf %50, %52 : vector<16x1xf32>
      %54 = arith.negf %53 : vector<16x1xf32>
      %55 = math.exp %54 : vector<16x1xf32>
      %cst_39 = arith.constant 1.000000e+00 : f32
      %56 = vector.broadcast %cst_39 : f32 to vector<16x1xf32>
      %57 = arith.addf %56, %55 : vector<16x1xf32>
      %58 = arith.divf %56, %57 : vector<16x1xf32>
      %c0_40 = arith.constant 0 : index
      %c0_41 = arith.constant 0 : index
      %59 = vector.load %arg12[%c0_40, %c0_41] : memref<16x128xf32, #tpu.memory_space<vmem>>, vector<16x128xf32>
      %c0_42 = arith.constant 0 : index
      %c0_43 = arith.constant 0 : index
      %60 = vector.load %arg10[%c0_42, %c0_43] : memref<1x128xf32, #tpu.memory_space<vmem>>, vector<1x128xf32>
      %61 = vector.broadcast %58 : vector<16x1xf32> to vector<16x128xf32>
      %62 = vector.broadcast %60 : vector<1x128xf32> to vector<16x128xf32>
      %63 = arith.mulf %61, %62 : vector<16x128xf32>
      %64 = arith.addf %59, %63 : vector<16x128xf32>
      %c0_44 = arith.constant 0 : index
      %c0_45 = arith.constant 0 : index
      %65 = vector.load %arg11[%c0_44, %c0_45] : memref<1x128xf32, #tpu.memory_space<vmem>>, vector<1x128xf32>
      %66 = vector.broadcast %65 : vector<1x128xf32> to vector<16x128xf32>
      %67 = arith.addf %64, %66 : vector<16x128xf32>
      %c0_46 = arith.constant 0 : index
      %c0_47 = arith.constant 0 : index
      %68 = vector.load %arg12[%c0_46, %c0_47] : memref<16x128xf32, #tpu.memory_space<vmem>>, vector<16x128xf32>
      tpu.vector_store %arg12[%c0_46, %c0_47], %67 {strides = array<i32>} : memref<16x128xf32, #tpu.memory_space<vmem>>, vector<16x128xf32>,
    } else {
    }
    return
  }
  func.func @transform_0(%arg0: i32, %arg1: i32) -> (i32, i32) {
    %c0_i32 = arith.constant 0 : i32
    %c0_i32_0 = arith.constant 0 : i32
    return %arg0, %c0_i32 : i32, i32
  }
  func.func @transform_1(%arg0: i32, %arg1: i32) -> (i32, i32) {
    %c0_i32 = arith.constant 0 : i32
    %c0_i32_0 = arith.constant 0 : i32
    return %c0_i32, %arg1 : i32, i32
  }
  func.func @transform_2(%arg0: i32, %arg1: i32) -> (i32, i32) {
    %c0_i32 = arith.constant 0 : i32
    %c0_i32_0 = arith.constant 0 : i32
    return %c0_i32, %arg1 : i32, i32
  }
  func.func @transform_3(%arg0: i32, %arg1: i32) -> (i32, i32) {
    %c0_i32 = arith.constant 0 : i32
    %c0_i32_0 = arith.constant 0 : i32
    return %arg1, %c0_i32 : i32, i32
  }
  func.func @transform_4(%arg0: i32, %arg1: i32) -> (i32, i32) {
    %c0_i32 = arith.constant 0 : i32
    %c0_i32_0 = arith.constant 0 : i32
    %c0_i32_1 = arith.constant 0 : i32
    return %c0_i32, %c0_i32_0 : i32, i32
  }
  func.func @transform_5(%arg0: i32, %arg1: i32) -> (i32, i32) {
    %c0_i32 = arith.constant 0 : i32
    %c0_i32_0 = arith.constant 0 : i32
    %c0_i32_1 = arith.constant 0 : i32
    return %c0_i32, %c0_i32_0 : i32, i32
  }
  func.func @transform_6(%arg0: i32, %arg1: i32) -> (i32, i32) {
    %c0_i32 = arith.constant 0 : i32
    %c0_i32_0 = arith.constant 0 : i32
    %c0_i32_1 = arith.constant 0 : i32
    return %c0_i32, %c0_i32_0 : i32, i32
  }
  func.func @transform_7(%arg0: i32, %arg1: i32) -> (i32, i32) {
    %c0_i32 = arith.constant 0 : i32
    %c0_i32_0 = arith.constant 0 : i32
    %c0_i32_1 = arith.constant 0 : i32
    return %c0_i32, %c0_i32_0 : i32, i32
  }
  func.func @transform_8(%arg0: i32, %arg1: i32) -> (i32, i32) {
    %c0_i32 = arith.constant 0 : i32
    %c0_i32_0 = arith.constant 0 : i32
    %c0_i32_1 = arith.constant 0 : i32
    return %c0_i32, %c0_i32_0 : i32, i32
  }
  func.func @transform_9(%arg0: i32, %arg1: i32) -> (i32, i32) {
    %c0_i32 = arith.constant 0 : i32
    %c0_i32_0 = arith.constant 0 : i32
    %c0_i32_1 = arith.constant 0 : i32
    return %c0_i32, %c0_i32_0 : i32, i32
  }
  func.func @transform_10(%arg0: i32, %arg1: i32) -> (i32, i32) {
    %c0_i32 = arith.constant 0 : i32
    %c0_i32_0 = arith.constant 0 : i32
    return %arg0, %c0_i32 : i32, i32
  }
  func.func @transform_11(%arg0: i32, %arg1: i32) -> (i32, i32) {
    %c0_i32 = arith.constant 0 : i32
    return %arg0, %arg1 : i32, i32
  }
}

</mosaic_0001>

<bundles_post_ra>
// kernel: tpu_custom_call.1
= control target key start
LH: loop header
LB: loop body
LE: loop exit
PB: predicated region body
PF: predicated region fallthrough
CT: control target
= control target key end

     0   :  { %18 = vsyncpa [#allocation7], 0  ;;  %s1126_s0 = inlined_call_operand.hbm [shape: bf16[16,128], index: 0, kind: input, shape index: {}]   ;;  %s1127_s1 = inlined_call_operand.hbm [shape: bf16[128,128], index: 1, kind: input, shape index: {}]   ;;  %s1128_s2 = inlined_call_operand.vmem [shape: f32[1,128], index: 2, kind: input, shape index: {}]   ;;  %s1129_s3 = inlined_call_operand.hbm [shape: bf16[128,128], index: 3, kind: input, shape index: {}]   ;;  %s1130_s4 = inlined_call_operand.vmem [shape: f32[1,128], index: 4, kind: input, shape index: {}]   ;;  %s1131_s5 = inlined_call_operand.vmem [shape: f32[1,128], index: 5, kind: input, shape index: {}]   ;;  %s1132_s6 = inlined_call_operand.<no memory space> [shape: f32[1,1], index: 6, kind: input, shape index: {}]   ;;  %s1133_s7 = inlined_call_operand.hbm [shape: bf16[128,128], index: 7, kind: input, shape index: {}]   ;;  %s1134_s8 = inlined_call_operand.vmem [shape: f32[1,128], index: 8, kind: input, shape index: {}]   ;;  %s1135_s9 = inlined_call_operand.vmem [shape: f32[1,128], index: 9, kind: input, shape index: {}]   ;;  %s1136_s10 = inlined_call_operand.hbm [shape: f32[16,128], index: 10, kind: output, shape index: {0}]   ;;  %s1137_s11 = inlined_call_operand.hbm [shape: f32[16,128], index: 11, kind: output, shape index: {1}]  }
   0x1   :  { %19 = vsyncpa [#allocation10], 0 }
   0x2   :  { %20 = vsyncpa [#allocation13], 0 }
   0x3   :  { %21 = vsyncpa [#allocation8], 0 }
   0x4   :  { %22 = vsyncpa [#allocation16], 0  ;;  %s942_s17 = smov [#allocation9]   ;;  %s943_s19 = smov [#allocation6]  }
   0x5   :  { %s40_s18 = sshll.u32 %s942_s17, 4  ;;  %s28_s20 = sshll.u32 %s943_s19, 4  ;;  %s41_s18 = int_to_ptr.vmem [resolvable:$true] %s40_s18  ;;  %s29_s20 = int_to_ptr.vmem [resolvable:$true] %s28_s20 }
   0x6   :  { %s820_s21 = scalar_lea.vmem %s41_s18, 1024  ;;  %p825_p1 = scmp.lt.s32.totalorder %s41_s18, %s41_s18 }
   0x7   :  { %p821_p0 = scmp.ne.s32.totalorder %s41_s18, %s820_s21  ;;  %p826_p2 = scmp.lt.s32.totalorder %s820_s21, %s820_s21 }
   0x9   :  { %p827_p3 = por %p826_p2, %p825_p1 }
   0xb   :  { %p828_p4 = pnand %p827_p3, %p821_p0 }
   0xd   :  { %831 = shalt.err (!%p828_p4)
}
   0xe   :  { %s944_s22 = smov 64   ;;  %s945_s23 = smov 4  }
   0xf   :  { %46 = dma.hbm_to_vmem [thread:$0]  %s1127_s1, 1024, %s41_s18, [#allocation10], %s944_s22, %s944_s22, %s945_s23  }
  0x10   :  { %s840_s26 = scalar_lea.vmem %s29_s20, 128  ;;  %p845_p6 = scmp.lt.s32.totalorder %s29_s20, %s29_s20 }
  0x11   :  { %p841_p5 = scmp.ne.s32.totalorder %s29_s20, %s840_s26  ;;  %p846_p7 = scmp.lt.s32.totalorder %s840_s26, %s840_s26 }
  0x13   :  { %p847_p8 = por %p846_p7, %p845_p6 }
  0x15   :  { %p848_p9 = pnand %p847_p8, %p841_p5 }
  0x17   :  { %851 = shalt.err (!%p848_p9)
}
  0x18   :  { %34 = dma.hbm_to_vmem [thread:$0]  %s1126_s0, 128, %s29_s20, [#allocation7], %s944_s22, %s944_s22, %s945_s23  }
  0x19   :  { %s946_s29 = smov [#allocation11]   ;;  %s947_s12 = smov [#allocation12]  }
  0x1a   :  { %s54_s30 = sshll.u32 %s946_s29, 4  ;;  %s72_s13 = sshll.u32 %s947_s12, 4  ;;  %s55_s30 = int_to_ptr.vmem [resolvable:$true] %s54_s30  ;;  %s73_s13 = int_to_ptr.vmem [resolvable:$true] %s72_s13 }
  0x1b   :  { %s860_s1 = scalar_lea.vmem %s55_s30, 1024  ;;  %p865_p11 = scmp.lt.s32.totalorder %s55_s30, %s55_s30 }
  0x1c   :  { %p861_p10 = scmp.ne.s32.totalorder %s55_s30, %s860_s1  ;;  %p866_p12 = scmp.lt.s32.totalorder %s860_s1, %s860_s1 }
  0x1e   :  { %p867_p13 = por %p866_p12, %p865_p11 }
  0x20   :  { %p868_p0 = pnand %p867_p13, %p861_p10 }
  0x22   :  { %871 = shalt.err (!%p868_p0)
}
  0x23   :  { %60 = dma.hbm_to_vmem [thread:$0]  %s1129_s3, 1024, %s55_s30, [#allocation10], %s944_s22, %s944_s22, %s945_s23  }
  0x24   :  { %s880_s0 = scalar_lea.vmem %s73_s13, 1024  ;;  %p885_p2 = scmp.lt.s32.totalorder %s73_s13, %s73_s13 }
  0x25   :  { %p881_p1 = scmp.ne.s32.totalorder %s73_s13, %s880_s0  ;;  %p886_p3 = scmp.lt.s32.totalorder %s880_s0, %s880_s0 }
  0x27   :  { %p887_p4 = por %p886_p3, %p885_p2 }
  0x29   :  { %p888_p5 = pnand %p887_p4, %p881_p1 }
  0x2b   :  { %891 = shalt.err (!%p888_p5)
}
  0x2c   :  { %78 = dma.hbm_to_vmem [thread:$0]  %s1133_s7, 1024, %s73_s13, [#allocation13], %s944_s22, %s944_s22, %s945_s23  }
  0x2d   :  { %932 = dma.done.wait [#allocation7], 128  }
  0x2e   :  { %933 = vsyncadd [#allocation7], 4294967168 }
  0x2f   :  { %934 = dma.done.wait [#allocation10], 2048  }
  0x30   :  { %935 = vsyncadd [#allocation10], 4294965248 }
  0x31   :  { %936 = dma.done.wait [#allocation13], 1024  }
  0x32   :  { %937 = vsyncadd [#allocation13], 4294966272  ;;  %v948_v0 = vmov 0.0   ;;  %vm949_vm0 = vmmov 0   ;;  %v767_v1 = vld [vmem:[#allocation9 + $0x38] sm:$0xff]   ;;  %v768_v2 = vld [vmem:[#allocation9 + $0x30] sm:$0xff]  }
  0x33   :  { %711 = vmatprep.subr.bf16.mxu1 %v948_v0  ;;  %727 = vmatprep.mubr.msk.bf16.mxu1 %vm949_vm0, %v948_v0  ;;  %v769_v3 = vld [vmem:[#allocation9 + $0x28] sm:$0xff]   ;;  %v770_v4 = vld [vmem:[#allocation9 + $0x20] sm:$0xff]   ;;  %v771_v5 = vld [vmem:[#allocation9 + $0x18] sm:$0xff]   ;;  %vm102_vm1 = vcmask 7168   ;;  %v950_v10 = vmov -1e+30  }
  0x34   :  { %691 = vmatprep.subr.bf16.mxu0 %v948_v0  ;;  %707 = vmatprep.mubr.msk.bf16.mxu0 %vm949_vm0, %v948_v0  ;;  %v772_v6 = vld [vmem:[#allocation9 + $0x10] sm:$0xff]   ;;  %v773_v7 = vld [vmem:[#allocation9 + $0x8] sm:$0xff]   ;;  %v774_v8 = vld [vmem:[#allocation9] sm:$0xff]   ;;  %103 = vst.msk [vmem:[#allocation2] sm:$0xff] %vm102_vm1, %v950_v10  ;;  %v951_v18 = vmov 0   ;;  %s952_s21 = smov [#allocation15]  }
  0x35   :  { %712 = vmatpush3.bf16.msra.mxu1 %v767_v1  ;;  %v775_v9 = vld [vmem:[#allocation6] sm:$0xff]   ;;  %104 = vst.msk [vmem:[#allocation2 + $0x8] sm:$0xff] %vm102_vm1, %v950_v10  ;;  %105 = vst.msk [vmem:[#allocation3] sm:$0xff] %vm102_vm1, %v948_v0  ;;  %765 = vset.pattern.permute.xlu1 %v951_v18  ;;  %v777_v20 = vld [vmem:[#allocation12 + $0x30] sm:$0xff]   ;;  %s613_s22 = sshll.u32 %s952_s21, 4  ;;  %s614_s22 = int_to_ptr.vmem [resolvable:$true] %s613_s22 }
  0x36   :  { %713 = vmatprep.subr.bf16.mxu1 %v948_v0  ;;  %106 = vst.msk [vmem:[#allocation3 + $0x8] sm:$0xff] %vm102_vm1, %v948_v0  ;;  %v640_v11 = vld [vmem:[%s1128_s2] ss:$0 sm:$0xff]  ;;  %766 = vset.pattern.permute.xlu0 %v951_v18  ;;  %v778_v21 = vld [vmem:[#allocation12 + $0x28] sm:$0xff]   ;;  %v779_v22 = vld [vmem:[#allocation12 + $0x20] sm:$0xff]   ;;  %p897_p7 = scmp.lt.s32.totalorder %s614_s22, %s614_s22 }
  0x37   :  { %v776_v19 = vld [vmem:[#allocation12 + $0x38] sm:$0xff]   ;;  %v781_v24 = vld [vmem:[#allocation12 + $0x10] sm:$0xff]   ;;  %v782_v25 = vld [vmem:[#allocation12 + $0x8] sm:$0xff]  }
  0x38   :  { %692 = vmatpush3.bf16.msra.mxu0 %v776_v19  ;;  %v780_v23 = vld [vmem:[#allocation12 + $0x18] sm:$0xff]   ;;  %v783_v26 = vld [vmem:[#allocation12] sm:$0xff]   ;;  %v785_v28 = vld [vmem:[#allocation11 + $0x30] sm:$0xff]  }
  0x39   :  { %714 = vmatpush3.bf16.msra.mxu1 %v768_v2  ;;  %693 = vmatprep.subr.bf16.mxu0 %v948_v0  ;;  %v784_v27 = vld [vmem:[#allocation11 + $0x38] sm:$0xff]   ;;  %v786_v30 = vld [vmem:[#allocation11 + $0x28] sm:$0xff]   ;;  %v787_v34 = vld [vmem:[#allocation11 + $0x20] sm:$0xff]  }
  0x3a   :  { %715 = vmatprep.subr.bf16.mxu1 %v948_v0  ;;  %v788_v38 = vld [vmem:[#allocation11 + $0x18] sm:$0xff]   ;;  %v789_v40 = vld [vmem:[#allocation11 + $0x10] sm:$0xff]   ;;  %v790_v41 = vld [vmem:[#allocation11 + $0x8] sm:$0xff]  }
  0x3b   :  { %v342_v29 = vld [vmem:[#allocation2] sm:$0xff]  ;;  %v791_v42 = vld [vmem:[#allocation11] sm:$0xff]  }
  0x3c   :  { %694 = vmatpush3.bf16.msra.mxu0 %v777_v20  ;;  %v343_v33 = vld [vmem:[#allocation2 + $0x8] sm:$0xff]  ;;  %v372_v59 = vld [vmem:[#allocation3] sm:$0xff]  ;;  %v658_v18 = vld [vmem:[%s1130_s4] ss:$0 sm:$0xff]  ;;  %s892_s4 = scalar_lea.vmem %s614_s22, 256 }
  0x3d   :  { %716 = vmatpush3.bf16.msra.mxu1 %v769_v3  ;;  %695 = vmatprep.subr.bf16.mxu0 %v948_v0  ;;  %v373_v63 = vld [vmem:[#allocation3 + $0x8] sm:$0xff]  ;;  %p893_p6 = scmp.ne.s32.totalorder %s614_s22, %s892_s4  ;;  %p898_p8 = scmp.lt.s32.totalorder %s892_s4, %s892_s4 }
  0x3e   :  { %717 = vmatprep.subr.bf16.mxu1 %v948_v0 }
  0x3f   :  { %p899_p9 = por %p898_p8, %p897_p7 }
  0x40   :  { %696 = vmatpush3.bf16.msra.mxu0 %v778_v21 }
  0x41   :  { %718 = vmatpush3.bf16.msra.mxu1 %v770_v4  ;;  %697 = vmatprep.subr.bf16.mxu0 %v948_v0  ;;  %p900_p10 = pnand %p899_p9, %p893_p6 }
  0x42   :  { %719 = vmatprep.subr.bf16.mxu1 %v948_v0 }
  0x44   :  { %698 = vmatpush3.bf16.msra.mxu0 %v779_v22 }
  0x45   :  { %720 = vmatpush3.bf16.msra.mxu1 %v771_v5  ;;  %699 = vmatprep.subr.bf16.mxu0 %v948_v0 }
  0x46   :  { %721 = vmatprep.subr.bf16.mxu1 %v948_v0 }
  0x48   :  { %700 = vmatpush3.bf16.msra.mxu0 %v780_v23  ;;  %v659_v23 = vld [vmem:[%s1131_s5] ss:$0 sm:$0xff] }
  0x49   :  { %722 = vmatpush3.bf16.msra.mxu1 %v772_v6  ;;  %701 = vmatprep.subr.bf16.mxu0 %v948_v0 }
  0x4a   :  { %723 = vmatprep.subr.bf16.mxu1 %v948_v0 }
  0x4c   :  { %702 = vmatpush3.bf16.msra.mxu0 %v781_v24 }
  0x4d   :  { %724 = vmatpush3.bf16.msra.mxu1 %v773_v7  ;;  %703 = vmatprep.subr.bf16.mxu0 %v948_v0 }
  0x4e   :  { %725 = vmatprep.subr.bf16.mxu1 %v948_v0 }
  0x50   :  { %704 = vmatpush3.bf16.msra.mxu0 %v782_v25 }
  0x51   :  { %726 = vmatpush3.bf16.msra.mxu1 %v774_v8  ;;  %705 = vmatprep.subr.bf16.mxu0 %v948_v0 }
  0x54   :  { %728 = vmatmul.mubr.bf16.vlgmr.msra.gmra.mxu1 %v775_v9  ;;  %706 = vmatpush3.bf16.msra.mxu0 %v783_v26 }
  0x55   :  { %731 = vmatprep.subr.bf16.mxu0 %v948_v0 }
  0x57   :  { %708 = vmatmul.mubr.bf16.vlgmr.msra.gmra.mxu0 %v775_v9 }
  0x58   :  { %732 = vmatpush3.bf16.msra.mxu0 %v784_v27  ;;  %747 = vmatprep.mubr.msk.bf16.mxu0 %vm949_vm0, %v948_v0 }
  0x59   :  { %733 = vmatprep.subr.bf16.mxu0 %v948_v0 }
  0x5c   :  { %734 = vmatpush3.bf16.msra.mxu0 %v785_v28 }
  0x5d   :  { %735 = vmatprep.subr.bf16.mxu0 %v948_v0 }
  0x60   :  { %736 = vmatpush3.bf16.msra.mxu0 %v786_v30 }
  0x61   :  { %737 = vmatprep.subr.bf16.mxu0 %v948_v0 }
  0x64   :  { %738 = vmatpush3.bf16.msra.mxu0 %v787_v34 }
  0x65   :  { %739 = vmatprep.subr.bf16.mxu0 %v948_v0 }
  0x68   :  { %740 = vmatpush3.bf16.msra.mxu0 %v788_v38 }
  0x69   :  { %741 = vmatprep.subr.bf16.mxu0 %v948_v0 }
  0x6c   :  { %742 = vmatpush3.bf16.msra.mxu0 %v789_v40 }
  0x6d   :  { %743 = vmatprep.subr.bf16.mxu0 %v948_v0 }
  0x70   :  { %744 = vmatpush3.bf16.msra.mxu0 %v790_v41 }
  0x71   :  { %745 = vmatprep.subr.bf16.mxu0 %v948_v0 }
  0x74   :  { %746 = vmatpush3.bf16.msra.mxu0 %v791_v42 }
 0x114   :  { %v333_v12 = vpop.f32.mrf.mxu1 }
 0x115   :  { %v1062_v13 = vadd.f32 %v640_v11, %v333_v12 }
 0x116   :  { %v729_v14 = vpop.f32.mrf.mxu1 }
 0x117   :  { %340 = vst [vmem:[#allocation15] sm:$0xff] %v1062_v13  ;;  %344 = vmax.xlane.f32.xlu0 %v1062_v13  ;;  %v1091_v52 = vpop.f32.mrf.mxu0 }
 0x118   :  { %v336_v15 = vpop.f32.mrf.mxu1 }
 0x119   :  { %v1066_v16 = vadd.f32 %v640_v11, %v336_v15  ;;  %v709_v53 = vpop.f32.mrf.mxu0 }
 0x11a   :  { %v730_v17 = vpop.f32.mrf.mxu1 }
 0x11b   :  { %341 = vst [vmem:[#allocation15 + $0x8] sm:$0xff] %v1066_v16  ;;  %346 = vmax.xlane.f32.xlu0 %v1066_v16  ;;  %v1093_v54 = vpop.f32.mrf.mxu0 }
 0x11d   :  { %v710_v55 = vpop.f32.mrf.mxu0 }
 0x1a0   :  { %v345_v31 = vpop.xlane.xlu0 %344 }
 0x1a1   :  { %v348_v32 = vmax.f32 %v342_v29, %v345_v31 }
 0x1a3   :  { %v350_v35 = vsub.f32 %v342_v29, %v348_v32  ;;  %509 = vst.msk [vmem:[#allocation2] sm:$0xff] %vm102_vm1, %v348_v32  ;;  %358 = vperm.xlu1 %765, %v348_v32  }
 0x1a4   :  { %v347_v36 = vpop.xlane.xlu0 %346 }
 0x1a5   :  { %v349_v37 = vmax.f32 %v343_v33, %v347_v36  ;;  %v352_v56 = vmul.f32 1.442695, %v350_v35 }
 0x1a7   :  { %v351_v39 = vsub.f32 %v343_v33, %v349_v37  ;;  %510 = vst.msk [vmem:[#allocation2 + $0x8] sm:$0xff] %vm102_vm1, %v349_v37  ;;  %363 = vperm.xlu1 %765, %v349_v37  }
 0x1a9   :  { %v354_v57 = vmul.f32 1.442695, %v351_v39 }
 0x21e   :  { %v359_v43 = vpop.permute.xlu1 %358 }
 0x21f   :  { %v366_v44 = vsub.f32 %v1062_v13, %v359_v43 }
 0x221   :  { %v368_v45 = vmul.f32 1.442695, %v366_v44 }
 0x222   :  { %v364_v46 = vpop.permute.xlu1 %363 }
 0x223   :  { %792 = vpow2.f32 %v368_v45  ;;  %v367_v47 = vsub.f32 %v1066_v16, %v364_v46 }
 0x225   :  { %v370_v48 = vmul.f32 1.442695, %v367_v47 }
 0x227   :  { %794 = vpow2.f32 %v370_v48 }
 0x228   :  { %796 = vpow2.f32 %v352_v56 }
 0x229   :  { %798 = vpow2.f32 %v354_v57 }
 0x230   :  { %v793_v49 = vpop.eup %792 }
 0x231   :  { %376 = vadd.xlane.f32.xlu0 %v793_v49 }
 0x234   :  { %v795_v50 = vpop.eup %794 }
 0x235   :  { %378 = vadd.xlane.f32.xlu1 %v795_v50  ;;  %v399_v51 = vpack.c.bf16 %v795_v50, %v793_v49  ;;  %v797_v58 = vpop.eup %796 }
 0x236   :  { %v374_v60 = vmul.f32 %v797_v58, %v372_v59  ;;  %v799_v61 = vpop.eup %798 }
 0x237   :  { %748 = vmatmul.mubr.bf16.vlgmr.msra.gmra.mxu0 %v399_v51  ;;  %v375_v1 = vmul.f32 %v799_v61, %v373_v63 }
 0x2ba   :  { %v377_v62 = vpop.xlane.xlu0 %376 }
 0x2bb   :  { %v380_v0 = vadd.f32 %v377_v62, %v374_v60 }
 0x2bd   :  { %383 = vst.msk [vmem:[#allocation3] sm:$0xff] %vm102_vm1, %v380_v0 }
 0x2be   :  { %v379_v2 = vpop.xlane.xlu1 %378 }
 0x2bf   :  { %v381_v3 = vadd.f32 %v379_v2, %v375_v1 }
 0x2c1   :  { %384 = vst.msk [vmem:[#allocation3 + $0x8] sm:$0xff] %vm102_vm1, %v381_v3 }
 0x2c4   :  { %v516_v4 = vld [vmem:[#allocation3] sm:$0xff] }
 0x2c5   :  { %520 = vperm.xlu0 %766, %v516_v4  }
 0x2c8   :  { %v517_v5 = vld [vmem:[#allocation3 + $0x8] sm:$0xff] }
 0x2c9   :  { %525 = vperm.xlu1 %765, %v517_v5   ;;  %389 = vperm.xlu0 %766, %v797_v58  }
 0x2cd   :  { %394 = vperm.xlu0 %766, %v799_v61  }
 0x2f7   :  { %v498_v6 = vpop.f32.mrf.mxu0 }
 0x2f9   :  { %v749_v7 = vpop.f32.mrf.mxu0 }
 0x2fb   :  { %v501_v8 = vpop.f32.mrf.mxu0 }
 0x2fd   :  { %v750_v9 = vpop.f32.mrf.mxu0 }
 0x340   :  { %v521_v10 = vpop.permute.xlu0 %520 }
 0x341   :  { %800 = vrcp.f32 %v521_v10 }
 0x344   :  { %v526_v11 = vpop.permute.xlu1 %525  ;;  %v390_v12 = vpop.permute.xlu0 %389 }
 0x345   :  { %802 = vrcp.f32 %v526_v11  ;;  %v397_v13 = vmul.f32 0.0, %v390_v12 }
 0x347   :  { %v505_v15 = vadd.f32 %v498_v6, %v397_v13 }
 0x348   :  { %v395_v14 = vpop.permute.xlu0 %394 }
 0x349   :  { %v398_v16 = vmul.f32 0.0, %v395_v14 }
 0x34b   :  { %v506_v20 = vadd.f32 %v501_v8, %v398_v16 }
 0x34e   :  { %v801_v17 = vpop.eup %800 }
 0x34f   :  { %v529_v19 = vmul.f32 %v801_v17, %v505_v15 }
 0x351   :  { %v539_v21 = vadd.f32 %v658_v18, %v529_v19 }
 0x352   :  { %v803_v22 = vpop.eup %802 }
 0x353   :  { %v531_v24 = vmul.f32 %v803_v22, %v506_v20  ;;  %v541_v25 = vmax.f32 %v539_v21, 0.0 }
 0x355   :  { %v550_v26 = vmul.f32 %v659_v23, %v541_v25  ;;  %v540_v27 = vadd.f32 %v658_v18, %v531_v24 }
 0x357   :  { %552 = vadd.xlane.f32.xlu1 %v550_v26  ;;  %v542_v28 = vmax.f32 %v540_v27, 0.0 }
 0x359   :  { %v551_v29 = vmul.f32 %v659_v23, %v542_v28 }
 0x35b   :  { %554 = vadd.xlane.f32.xlu0 %v551_v29 }
 0x35c   :  { %903 = shalt.err (!%p900_p10)
}
 0x35d   :  { %s953_s23 = smov 128   ;;  %s954_s5 = smov 8   ;;  %v557_v30 = vstv %s1132_s6  ;;  %v662_v41 = vld [vmem:[%s1134_s8] ss:$0 sm:$0xff] }
 0x35e   :  { %619 = dma.vmem_to_hbm [thread:$0]  %s614_s22, 256, %s1137_s11, [#allocation16], %s953_s23, %s953_s23, %s954_s5  }
 0x35f   :  { %v663_v44 = vld [vmem:[%s1135_s9] ss:$0 sm:$0xff]  ;;  %s955_s30 = smov [#allocation14]  }
 0x360   :  { %s601_s12 = sshll.u32 %s955_s30, 4  ;;  %s602_s12 = int_to_ptr.vmem [resolvable:$true] %s601_s12 }
 0x361   :  { %s912_s8 = scalar_lea.vmem %s602_s12, 256  ;;  %p917_p12 = scmp.lt.s32.totalorder %s602_s12, %s602_s12 }
 0x362   :  { %p913_p11 = scmp.ne.s32.totalorder %s602_s12, %s912_s8  ;;  %p918_p13 = scmp.lt.s32.totalorder %s912_s8, %s912_s8 }
 0x364   :  { %p919_p0 = por %p918_p13, %p917_p12 }
 0x366   :  { %p920_p1 = pnand %p919_p0, %p913_p11 }
 0x3e0   :  { %v553_v31 = vpop.xlane.xlu1 %552 }
 0x3e1   :  { %v558_v32 = vadd.f32 %v557_v30, %v553_v31 }
 0x3e3   :  { %v660_v33 = vmul.f32 -1.442695, %v558_v32 }
 0x3e4   :  { %v555_v34 = vpop.xlane.xlu0 %554 }
 0x3e5   :  { %804 = vpow2.f32 %v660_v33  ;;  %v559_v35 = vadd.f32 %v557_v30, %v555_v34 }
 0x3e7   :  { %v661_v36 = vmul.f32 -1.442695, %v559_v35 }
 0x3e9   :  { %806 = vpow2.f32 %v661_v36 }
 0x3f2   :  { %v805_v37 = vpop.eup %804 }
 0x3f3   :  { %v566_v38 = vadd.f32 1.0, %v805_v37 }
 0x3f5   :  { %808 = vrcp.f32 %v566_v38 }
 0x3f6   :  { %v807_v39 = vpop.eup %806 }
 0x3f7   :  { %v567_v40 = vadd.f32 1.0, %v807_v39 }
 0x3f9   :  { %810 = vrcp.f32 %v567_v40 }
 0x402   :  { %v809_v42 = vpop.eup %808 }
 0x403   :  { %v581_v43 = vmul.f32 %v809_v42, %v662_v41 }
 0x405   :  { %v583_v45 = vadd.f32 %v581_v43, %v1091_v52 }
 0x406   :  { %v811_v46 = vpop.eup %810 }
 0x407   :  { %v582_v47 = vmul.f32 %v811_v46, %v662_v41  ;;  %v592_v48 = vadd.f32 %v663_v44, %v583_v45 }
 0x409   :  { %v584_v49 = vadd.f32 %v582_v47, %v1093_v54  ;;  %594 = vst [vmem:[#allocation14] sm:$0xff] %v592_v48 }
 0x40b   :  { %v593_v50 = vadd.f32 %v663_v44, %v584_v49 }
 0x40d   :  { %595 = vst [vmem:[#allocation14 + $0x8] sm:$0xff] %v593_v50 }
 0x40e   :  { %923 = shalt.err (!%p920_p1)
}
 0x40f   :  { %607 = dma.vmem_to_hbm [thread:$0]  %s602_s12, 256, %s1136_s10, [#allocation8], %s953_s23, %s953_s23, %s954_s5  }
 0x410   :  { %938 = dma.done.wait [#allocation8], 256  }
 0x411   :  { %939 = vsyncadd [#allocation8], 4294967040 }
 0x412   :  { %940 = dma.done.wait [#allocation16], 256  }
 0x413   :  { %941 = vsyncadd [#allocation16], 4294967040 }
 0x414   :  { %626 = vsyncpa [#allocation7], 1 }
 0x415   :  { %627 = vsyncpa [#allocation10], 1 }
 0x416   :  { %628 = vsyncpa [#allocation13], 1 }
 0x417   :  { %629 = vsyncpa [#allocation8], 1 }
 0x418   :  { %630 = vsyncpa [#allocation16], 1 }

</bundles_post_ra>
